<compile_context>
chip_gen: v6e
topology: v6e:2x2x1
jax: 0.10.0
libtpu: 0.0.40
codegen_flags: <defaults>
</compile_context>

<pallas_src>
import jax
import jax.numpy as jnp
from jax.experimental import pallas as pl
from jax.experimental.pallas import tpu as pltpu


_TARGET_TILE_BYTES = 4 << 20          # ~4 MiB per (ts, lane) slice (x or table)
_VMEM_FOOTPRINT_BUDGET = 40 << 20     # double-buffered in+out+tables estimate cap
_VMEM_LIMIT_BYTES = 48 << 20          # safe on v5e/v6e (128 MiB) and v7x (64 MiB)


def _rope_kernel(cos_ref, sin_prev_ref, sin_next_ref, x_ref, o_ref):
    """x_ref/o_ref: (TBH, TS, LANE) interleaved block. Tables: (TS, LANE) f32."""
    x = x_ref[...].astype(jnp.float32)
    d = x.shape[-1]
    # np.roll semantics: roll(x, s, axis)[..., k] == x[..., (k - s) % d]
    x_prev = pltpu.roll(x, shift=1, axis=2)      # x[..., k-1]
    x_next = pltpu.roll(x, shift=d - 1, axis=2)  # x[..., k+1]
    out = (x * cos_ref[...]
           + x_next * sin_next_ref[...]          # even lanes: -sin * x_odd
           + x_prev * sin_prev_ref[...])         # odd  lanes: +sin * x_even
    o_ref[...] = out.astype(o_ref.dtype)


def _rope_tables(seq_len: int, dim: int, base: int):
    """Precomputed interleaved-layout trig tables (trig hoisted out of the kernel)."""
    exponents = jnp.arange(0, dim, 2, dtype=jnp.float32) / dim
    inv_freq = 1.0 / (jnp.float32(base) ** exponents)           # (D/2,)
    positions = jnp.arange(seq_len, dtype=jnp.float32)
    angles = positions[:, None] * inv_freq[None, :]             # (S, D/2)
    sin = jnp.sin(angles)
    cos = jnp.cos(angles)
    zeros = jnp.zeros_like(sin)
    cos_i = jnp.repeat(cos, 2, axis=-1)                                 # [ c, c]
    sin_next = jnp.stack([-sin, zeros], axis=-1).reshape(seq_len, dim)  # [-s, 0]
    sin_prev = jnp.stack([zeros, sin], axis=-1).reshape(seq_len, dim)   # [ 0, s]
    return cos_i, sin_prev, sin_next


def _largest_divisor_at_most(n: int, cap: int, multiple_of: int = 1):
    """Largest divisor of n that is <= cap and a multiple of `multiple_of`, or None."""
    cap = min(cap, n)
    start = cap - (cap % multiple_of)
    for d in range(start, 0, -multiple_of):
        if d >= 1 and n % d == 0:
            return d
    return None


def _choose_tiles(bh: int, s_rows: int, lane: int, x_itemsize: int):
    """Pick (tbh, ts): big tiles (amortize ~0.35us/step) under a VMEM budget."""
    # Sublane alignment: 8 rows for f32, 16 for bf16, 32 for 1-byte dtypes.
    sublane = max(8, 32 // x_itemsize)

    row_x_bytes = lane * x_itemsize
    row_tab_bytes = lane * 4
    ts_cap = _TARGET_TILE_BYTES // max(row_x_bytes, row_tab_bytes)
    ts_cap = max(sublane, (ts_cap // sublane) * sublane)

    if s_rows <= ts_cap:
        ts = s_rows                      # full seq dim in one block (always legal)
    else:
        d = _largest_divisor_at_most(s_rows, ts_cap, multiple_of=sublane)
        ts = d if d is not None else ts_cap   # ragged last block handled via cdiv grid

    # Grow tbh until the double-buffered footprint estimate hits the budget:
    #   2 * (x_in + out + 3 tables) = 2 * (2*tbh*ts*lane*xb + 3*ts*lane*4)
    table_bytes = 3 * ts * lane * 4
    per_bh_bytes = 2 * ts * lane * x_itemsize
    avail = max(per_bh_bytes, _VMEM_FOOTPRINT_BUDGET // 2 - table_bytes)
    tbh_cap = max(1, avail // per_bh_bytes)
    tbh = _largest_divisor_at_most(bh, min(bh, tbh_cap)) or 1

    # Keep >= 2 blocks on a parallel grid axis when possible (v7x has 2 TCs).
    if pl.cdiv(s_rows, ts) < 2 and bh >= 2 and bh // tbh < 2:
        tbh = _largest_divisor_at_most(bh, bh // 2) or 1
    return tbh, ts


def rope_pallas(x: jax.Array, base: int = 10000) -> jax.Array:
    """Apply interleaved RoPE to x of shape (B, H, S, D)."""
    B, H, S, D = x.shape
    assert D % 2 == 0, "dim must be even"
    BH = B * H

    cos_i, sin_prev, sin_next = _rope_tables(S, D, base)   # (S, D) f32

    # Lane-dense packing for small head dims: (BH, S, D) -> (BH, S/k, 128).
    lane, s_rows = D, S
    if D < 128 and 128 % D == 0 and S % (128 // D) == 0:
        k = 128 // D
        lane, s_rows = 128, S // k
        cos_i = cos_i.reshape(s_rows, lane)
        sin_prev = sin_prev.reshape(s_rows, lane)
        sin_next = sin_next.reshape(s_rows, lane)

    xf = x.reshape(BH, s_rows, lane)                        # metadata-only reshape

    tbh, ts = _choose_tiles(BH, s_rows, lane, x.dtype.itemsize)
    # Seq axis is the SLOW grid axis so the tables stay resident across the
    # fast (batch*head) axis and are re-DMA'd only when the seq block changes.
    grid = (pl.cdiv(s_rows, ts), pl.cdiv(BH, tbh))

    out = pl.pallas_call(
        _rope_kernel,
        out_shape=jax.ShapeDtypeStruct((BH, s_rows, lane), x.dtype),
        grid_spec=pltpu.PrefetchScalarGridSpec(
            num_scalar_prefetch=0,
            grid=grid,
            in_specs=[
                pl.BlockSpec((ts, lane), lambda j, i: (j, 0)),          # cos (resident over i)
                pl.BlockSpec((ts, lane), lambda j, i: (j, 0)),          # sin_prev
                pl.BlockSpec((ts, lane), lambda j, i: (j, 0)),          # sin_next
                pl.BlockSpec((tbh, ts, lane), lambda j, i: (i, j, 0)),  # x (interleaved)
            ],
            out_specs=pl.BlockSpec((tbh, ts, lane), lambda j, i: (i, j, 0)),
        ),
        compiler_params=pltpu.CompilerParams(
            dimension_semantics=("parallel", "parallel"),
            vmem_limit_bytes=_VMEM_LIMIT_BYTES,
        ),
    )(cos_i, sin_prev, sin_next, xf)

    return out.reshape(B, H, S, D)


def rope_reference(x: jax.Array, base: int = 10000) -> jax.Array:
    """Pure-JAX reference mirroring the PyTorch forward exactly."""
    B, H, S, D = x.shape
    exponents = jnp.arange(0, D, 2, dtype=jnp.float32) / D
    inv_freq = 1.0 / (base ** exponents)
    positions = jnp.arange(S, dtype=jnp.float32)
    angles = positions[:, None] * inv_freq[None, :]     # (S, D/2)
    sin = jnp.sin(angles)[None, None]                   # (1, 1, S, D/2)
    cos = jnp.cos(angles)[None, None]
    x_even = x[..., 0::2]
    x_odd = x[..., 1::2]
    r_even = x_even * cos - x_odd * sin
    r_odd = x_even * sin + x_odd * cos
    return jnp.stack([r_even, r_odd], axis=-1).reshape(B, H, S, D).astype(x.dtype)


if __name__ == "__main__":
    key = jax.random.PRNGKey(0)

    # Primary small test shape (matches the module's (B, H, S, D) contract).
    B, H, S, D = 2, 4, 8, 32
    x = jax.random.normal(key, (B, H, S, D), dtype=jnp.float32)
    out = jax.block_until_ready(rope_pallas(x))
    ref = rope_reference(x)
    assert out.shape == x.shape and out.dtype == x.dtype
    assert jnp.allclose(out, ref, atol=1e-5, rtol=1e-5), "mismatch vs reference (shape 1)"

    # Already-lane-dense head dim (D=128) path.
    x2 = jax.random.normal(jax.random.PRNGKey(0), (1, 2, 64, 128), dtype=jnp.float32)
    out2 = jax.block_until_ready(rope_pallas(x2))
    ref2 = rope_reference(x2)
    assert jnp.allclose(out2, ref2, atol=1e-5, rtol=1e-5), "mismatch vs reference (shape 2)"

    # bf16 activations with a packed (D=64 -> lane 128) layout.
    x3 = jax.random.normal(jax.random.PRNGKey(0), (2, 4, 16, 64), dtype=jnp.bfloat16)
    out3 = jax.block_until_ready(rope_pallas(x3))
    ref3 = rope_reference(x3)
    assert out3.dtype == jnp.bfloat16
    assert jnp.allclose(out3.astype(jnp.float32), ref3.astype(jnp.float32),
                        atol=3e-2, rtol=2e-2), "mismatch vs reference (shape 3, bf16)"

    print("KERNEL_OK")
</pallas_src>

<mosaic_0001>
module attributes {stable_mosaic.version = 11 : i64} {
  func.func @_rope_kernel(%arg0: i32, %arg1: i32, %arg2: memref<2x128xf32, #tpu.memory_space<vmem>>, %arg3: memref<2x128xf32, #tpu.memory_space<vmem>>, %arg4: memref<2x128xf32, #tpu.memory_space<vmem>>, %arg5: memref<4x2x128xf32, #tpu.memory_space<vmem>>, %arg6: memref<4x2x128xf32, #tpu.memory_space<vmem>>) attributes {dimension_semantics = [#tpu.dimension_semantics<parallel>, #tpu.dimension_semantics<parallel>], iteration_bounds = array<i64: 1, 2>, scalar_prefetch = 0 : i64, scratch_operands = 0 : i64, tpu.core_type = #tpu.core_type<tc>, window_params = [{transform_indices = @transform_0, window_bounds = array<i64: 2, 128>}, {transform_indices = @transform_1, window_bounds = array<i64: 2, 128>}, {transform_indices = @transform_2, window_bounds = array<i64: 2, 128>}, {transform_indices = @transform_3, window_bounds = array<i64: 4, 2, 128>}, {transform_indices = @transform_4, window_bounds = array<i64: 4, 2, 128>}]} {
    %c0 = arith.constant 0 : index
    %c0_0 = arith.constant 0 : index
    %c0_1 = arith.constant 0 : index
    %0 = vector.load %arg5[%c0, %c0_0, %c0_1] : memref<4x2x128xf32, #tpu.memory_space<vmem>>, vector<4x2x128xf32>
    %c1_i32 = arith.constant 1 : i32
    %1 = tpu.dynamic_rotate %0 by %c1_i32 dim 2 : vector<4x2x128xf32>, i32 -> vector<4x2x128xf32>
    %c127_i32 = arith.constant 127 : i32
    %2 = tpu.dynamic_rotate %0 by %c127_i32 dim 2 : vector<4x2x128xf32>, i32 -> vector<4x2x128xf32>
    %c0_2 = arith.constant 0 : index
    %c0_3 = arith.constant 0 : index
    %3 = vector.load %arg2[%c0_2, %c0_3] : memref<2x128xf32, #tpu.memory_space<vmem>>, vector<2x128xf32>
    %4 = vector.shape_cast %3 : vector<2x128xf32> to vector<1x2x128xf32>
    %5 = vector.broadcast %4 : vector<1x2x128xf32> to vector<4x2x128xf32>
    %6 = arith.mulf %0, %5 : vector<4x2x128xf32>
    %c0_4 = arith.constant 0 : index
    %c0_5 = arith.constant 0 : index
    %7 = vector.load %arg4[%c0_4, %c0_5] : memref<2x128xf32, #tpu.memory_space<vmem>>, vector<2x128xf32>
    %8 = vector.shape_cast %7 : vector<2x128xf32> to vector<1x2x128xf32>
    %9 = vector.broadcast %8 : vector<1x2x128xf32> to vector<4x2x128xf32>
    %10 = arith.mulf %2, %9 : vector<4x2x128xf32>
    %11 = arith.addf %6, %10 : vector<4x2x128xf32>
    %c0_6 = arith.constant 0 : index
    %c0_7 = arith.constant 0 : index
    %12 = vector.load %arg3[%c0_6, %c0_7] : memref<2x128xf32, #tpu.memory_space<vmem>>, vector<2x128xf32>
    %13 = vector.shape_cast %12 : vector<2x128xf32> to vector<1x2x128xf32>
    %14 = vector.broadcast %13 : vector<1x2x128xf32> to vector<4x2x128xf32>
    %15 = arith.mulf %1, %14 : vector<4x2x128xf32>
    %16 = arith.addf %11, %15 : vector<4x2x128xf32>
    %c0_8 = arith.constant 0 : index
    %c0_9 = arith.constant 0 : index
    %c0_10 = arith.constant 0 : index
    %17 = vector.load %arg6[%c0_8, %c0_9, %c0_10] : memref<4x2x128xf32, #tpu.memory_space<vmem>>, vector<4x2x128xf32>
    tpu.vector_store %arg6[%c0_8, %c0_9, %c0_10], %16 {strides = array<i32>} : memref<4x2x128xf32, #tpu.memory_space<vmem>>, vector<4x2x128xf32>,
    return
  }
  func.func @transform_0(%arg0: i32, %arg1: i32) -> (i32, i32) {
    %c0_i32 = arith.constant 0 : i32
    %c0_i32_0 = arith.constant 0 : i32
    return %arg0, %c0_i32 : i32, i32
  }
  func.func @transform_1(%arg0: i32, %arg1: i32) -> (i32, i32) {
    %c0_i32 = arith.constant 0 : i32
    %c0_i32_0 = arith.constant 0 : i32
    return %arg0, %c0_i32 : i32, i32
  }
  func.func @transform_2(%arg0: i32, %arg1: i32) -> (i32, i32) {
    %c0_i32 = arith.constant 0 : i32
    %c0_i32_0 = arith.constant 0 : i32
    return %arg0, %c0_i32 : i32, i32
  }
  func.func @transform_3(%arg0: i32, %arg1: i32) -> (i32, i32, i32) {
    %c0_i32 = arith.constant 0 : i32
    %c0_i32_0 = arith.constant 0 : i32
    return %arg1, %arg0, %c0_i32 : i32, i32, i32
  }
  func.func @transform_4(%arg0: i32, %arg1: i32) -> (i32, i32, i32) {
    %c0_i32 = arith.constant 0 : i32
    %c0_i32_0 = arith.constant 0 : i32
    return %arg1, %arg0, %c0_i32 : i32, i32, i32
  }
}

</mosaic_0001>

<bundles_post_ra>
// kernel: tpu_custom_call.1
= control target key start
LH: loop header
LB: loop body
LE: loop exit
PB: predicated region body
PF: predicated region fallthrough
CT: control target
= control target key end

     0   :  { %s991_s0 = inlined_call_operand.hbm [shape: f32[2,128], index: 0, kind: input, shape index: {}]   ;;  %s992_s1 = inlined_call_operand.hbm [shape: f32[2,128], index: 1, kind: input, shape index: {}]   ;;  %s993_s2 = inlined_call_operand.vmem [shape: f32[2,128], index: 2, kind: input, shape index: {}]   ;;  %s994_s3 = inlined_call_operand.hbm [shape: f32[8,2,128], index: 3, kind: input, shape index: {}]   ;;  %s995_s4 = inlined_call_operand.hbm [shape: f32[8,2,128], index: 4, kind: output, shape index: {}]  }
   0x1   :  { %1001 = sst [smem:[#allocation13_spill]] %s991_s0 }
   0x2   :  { %1002 = sst [smem:[#allocation14_spill]] %s992_s1 }
   0x3   :  { %9 = vsyncpa [#allocation3], 0 }
   0x4   :  { %10 = vsyncpa [#allocation6], 0 }
   0x5   :  { %11 = vsyncpa [#allocation4], 0 }
   0x6   :  { %13 = vsyncpa [#allocation4 + $0x1], 0  ;;  %s790_s15 = smov 0   ;;  %s792_s16 = smov 0  }
   0x7   :  { %s794_s17 = smov 0   ;;  %s796_s18 = smov 0  }
   0x8   :  { %s798_s19 = smov 0   ;;  %s800_s20 = smov 0  }
   0x9 LB: > { %s821_s21 = sadd.s32 4294967295, %s753_s20   ;;  %s475_s22 = sadd.s32 4294967294, %s753_s20   ;;  %s753_s20 = sphi %s800_s20, %s19_s20   ;;  %s749_s19 = sphi %s798_s19, %s1026_s19   ;;  %s745_s18 = sphi %s796_s18, %s1025_s18   ;;  %s741_s17 = sphi %s794_s17, %s1024_s17   ;;  %s737_s16 = sphi %s792_s16, %s1023_s16   ;;  %s733_s15 = sphi %s790_s15, %s1022_s15  }
   0xa   : > { %s118_s23 = sadd.s32 1, %s741_s17  ;;  %p125_p0 = scmp.ne.s32.totalorder %s741_s17, %s737_s16 }
   0xb   : > { %p126_p1 = scmp.eq.s32.totalorder %s753_s20, 0  ;;  %p131_p2 = scmp.ne.s32.totalorder %s737_s16, %s733_s15 }
   0xc   : > { %p997_p3 = scmp.eq.s32.totalorder %s821_s21, 0  ;;  %p157_p4 = scmp.eq.s32.totalorder %s821_s21, 1 }
   0xd   : > { %p832_p5 = por %p126_p1, %p125_p0  ;;  %p163_p6 = scmp.eq.s32.totalorder %s475_s22, 1 }
   0xe   : > { %p838_p7 = por %p997_p3, %p131_p2  ;;  %p842_p8 = por %p157_p4, %p125_p0 }
   0xf   : > { %p846_p9 = por %p163_p6, %p131_p2  ;;  %p476_p10 = scmp.ge.s32.totalorder %s753_s20, 1 }
  0x10   : > { %s1004_s25 = scalar_select %p838_p7, 1, 0 }
  0x11   : > { %s1005_s26 = scalar_select %p842_p8, 1, 0 }
  0x12   : > { %s1006_s27 = scalar_select %p846_p9, 1, 0 }
  0x13   : > { %p170_p11 = scmp.lt.s32.totalorder %s753_s20, 3  ;;  %s755_s29 = smov [#allocation2]  }
  0x14   : > { %s185_s30 = sshll.u32 %s755_s29, 4  ;;  %p525_p1 = scmp.lt.s32.totalorder %s753_s20, 2  ;;  %s186_s30 = int_to_ptr.vmem [resolvable:$true] %s185_s30 }
  0x15   : > { %p853_p13 = pnand %p476_p10, %p170_p11  ;;  %s756_s6 = smov [#allocation5]  }
  0x16   : > { %p862_p4 = pnand %p525_p1, %p832_p5  ;;  %s198_s7 = sshll.u32 %s756_s6, 4  ;;  %s199_s7 = int_to_ptr.vmem [resolvable:$true] %s198_s7 }
  0x17   : > { %s1007_s28 = scalar_select %p853_p13, 1, 0 }
  0x18   : > { %p508_p0 = pneg %p853_p13  ;;  %s596_s9 = scalar_lea.vmem %s186_s30, 32 }
  0x19   : > { %s1008_s5 = scalar_select %p862_p4, 1, 0 }
  0x1a   : > { %p868_p2 = pnand %p508_p0, %p997_p3  ;;  %p597_p10 = scmp.ne.s32.totalorder %s186_s30, %s596_s9 }
  0x1b   : > { %p604_p1 = scmp.lt.s32.totalorder %s186_s30, %s186_s30  ;;  %p605_p12 = scmp.lt.s32.totalorder %s596_s9, %s596_s9 }
  0x1c   : > { %p587_p6 = pneg %p868_p2 }
  0x1d   : > { %p606_p9 = por %p605_p12, %p604_p1 }
  0x1e   : > { %p599_p5 = pnand %p597_p10, %p587_p6 }
  0x20   : > { %p600_p11 = pneg %p599_p5 }
  0x22   : > { %p607_p8 = pnand %p606_p9, %p600_p11 }
  0x24   : > { %610 = shalt.err (!%p607_p8)
}
  0x25   : > { %s1010_s0 = sld [smem:[#allocation13_spill]]  ;;  %s622_s12 = scalar_lea.vmem %s199_s7, 32 }
  0x26   : > { %p623_p0 = scmp.ne.s32.totalorder %s199_s7, %s622_s12  ;;  %p630_p10 = scmp.lt.s32.totalorder %s199_s7, %s199_s7 }
  0x27   : > { %p631_p5 = scmp.lt.s32.totalorder %s622_s12, %s622_s12 }
  0x28   : > { %p625_p3 = pnand %p623_p0, %p587_p6 }
  0x29   : > { %p632_p13 = por %p631_p5, %p630_p10 }
  0x2a   : > { %p626_p7 = pneg %p625_p3 }
  0x2b   : > { %511 = dma.hbm_to_vmem [thread:$0]  (!%p868_p2), %s1010_s0, 32, %s186_s30, [#allocation3]  }
  0x2c   : > { %p633_p4 = pnand %p632_p13, %p626_p7 }
  0x2e   : > { %636 = shalt.err (!%p633_p4)
}
  0x2f   : > { %s1011_s1 = sld [smem:[#allocation14_spill]]  ;;  %s28_s22 = sadd.s32 1, %s749_s19 }
  0x30   : > { %s216_s24 = sand.u32 1, %s753_s20   ;;  %p29_p3 = scmp.ge.s32.totalorder %s28_s22, 2 }
  0x31   : > { %s218_s29 = sand.u32 1, %s741_s17   ;;  %s494_s30 = sshll.u32 %s749_s19, 7 }
  0x32   : > { %s1028_s22 = smov (%p29_p3, %s28_s22), 0  ;;  %s481_s6 = sshll.u32 %s218_s29, 3 }
  0x33   : > { %s227_s10 = scalar_lea.hbm %s994_s3, %s494_s30  ;;  %s113_s11 = ssub.s32 %s749_s19, %s1028_s22 }
  0x34   : > { %p116_p7 = scmp.eq.s32.totalorder %s113_s11, 0  ;;  %s220_s12 = scalar_lea.vmem [#allocation7], %s481_s6 }
  0x35   : > { %514 = dma.hbm_to_vmem [thread:$0]  (!%p868_p2), %s1011_s1, 32, %s199_s7, [#allocation6]  }
  0x36   : > { %s228_s13 = sshll.u32 %s220_s12, 4  ;;  %s217_s14 = scalar_lea.sflag [#allocation3], %s216_s24  ;;  %s229_s13 = int_to_ptr.vmem [resolvable:$true] %s228_s13 }
  0x37   : > { %s904_s7 = scalar_select %p116_p7, %s741_s17, %s118_s23  }
  0x38   : > { %p1012_p8 = scmp.ne.s32.totalorder %s1008_s5, 0  ;;  %s650_s0 = scalar_lea.vmem %s229_s13, 128 }
  0x39   : > { %p651_p12 = scmp.ne.s32.totalorder %s229_s13, %s650_s0  ;;  %s757_s29 = smov [#allocation7]  }
  0x3a   : > { %p639_p9 = pneg %p1012_p8  ;;  %s655_s1 = sshll.u32 %s757_s29, 4  ;;  %s656_s1 = int_to_ptr.vmem [resolvable:$false] %s655_s1 }
  0x3b   : > { %s657_s8 = scalar_lea.vmem %s656_s1, 256  ;;  %p658_p2 = scmp.lt.s32.totalorder %s229_s13, %s656_s1 }
  0x3c   : > { %p653_p13 = pnand %p651_p12, %p639_p9  ;;  %p659_p6 = scmp.lt.s32.totalorder %s657_s8, %s650_s0 }
  0x3e   : > { %p654_p4 = pneg %p653_p13  ;;  %p660_p11 = por %p659_p6, %p658_p2 }
  0x40   : > { %p661_p1 = pnand %p660_p11, %p654_p4 }
  0x42   : > { %664 = shalt.err (!%p661_p1)
}
  0x43   : > { %s758_s30 = smov 32   ;;  %s759_s23 = smov 2  }
  0x44   : > { %518 = dma.hbm_to_vmem [thread:$0]  (!%p1012_p8), %s227_s10, 128, %s229_s13, %s217_s14, %s758_s30, %s758_s30, %s759_s23  }
  0x45   : > { %p1013_p0 = scmp.ne.s32.totalorder %s1007_s28, 0 }
  0x46   : > { %p1014_p10 = scmp.eq.s32.totalorder (!%p1013_p0), %s821_s21, 0 }
  0x47   : > { %240 = sbr.rel (%p1013_p0) target bundleno = 232 (0xe8), region = 36 }
  0x4c   : > { %716 = dma.done.wait (%p1014_p10), [#allocation3], 32   ;;  %p1015_p5 = pmov %p1014_p10 }
  0x4e   : > { %718 = vsyncadd (%p1015_p5), [#allocation3], 4294967264  ;;  %p1016_p3 = pmov %p1015_p5 }
  0x50   : > { %720 = dma.done.wait (%p1016_p3), [#allocation6], 32   ;;  %p1017_p7 = pmov %p1016_p3 }
  0x51   : > { %s250_s0 = sand.u32 1, %s821_s21   ;;  %s252_s1 = sand.u32 1, %s737_s16  }
  0x52   : > { %722 = vsyncadd (%p1017_p7), [#allocation6], 4294967264  ;;  %s924_s28 = sshll.u32 %s252_s1, 3  ;;  %s251_s5 = scalar_lea.sflag [#allocation3], %s250_s0 }
  0x53   : > { %s254_s24 = scalar_lea.vmem [#allocation7], %s924_s28  ;;  %p1018_p8 = scmp.ne.s32.totalorder %s1004_s25, 0 }
  0x55   : > { %724 = dma.done.wait (%p1018_p8), %s251_s5, 128  }
  0x56   : > { %726 = vsyncadd (%p1018_p8), %s251_s5, 4294967168  ;;  %v291_v0 = vld [vmem:[%s254_s24 + $0x4] sm:$0x3]  ;;  %v289_v1 = vld [vmem:[%s254_s24] sm:$0x3]  ;;  %s760_s6 = smov 127  }
  0x57   : > { %305 = vrot.lane.b32.xlu1 %v291_v0, %s760_s6  ;;  %301 = vrot.lane.b32.xlu0 %v289_v1, %s760_s6  ;;  %v292_v2 = vld [vmem:[%s254_s24 + $0x6] sm:$0x3]  ;;  %v290_v3 = vld [vmem:[%s254_s24 + $0x2] sm:$0x3]  ;;  %s761_s21 = smov 1   ;;  %s282_s10 = scalar_lea.vmem [#allocation8], %s924_s28 }
  0x58   : > { %v309_v6 = vld [vmem:[#allocation2] sm:$0x3]  ;;  %v323_v14 = vld [vmem:[#allocation5] sm:$0x3]  ;;  %s351_s11 = sshll.u32 %s282_s10, 4  ;;  %s495_s12 = sshll.u32 %s745_s18, 7  ;;  %s936_s11 = int_to_ptr.vmem [resolvable:$true] %s351_s11 }
  0x59   : > { %v314_v7 = vld [vmem:[%s993_s2] sm:$0x3]  ;;  %v310_v8 = vmul.f32 %v309_v6, %v289_v1  ;;  %v311_v12 = vmul.f32 %v309_v6, %v290_v3  ;;  %v312_v15 = vmul.f32 %v309_v6, %v291_v0  ;;  %v313_v16 = vmul.f32 %v309_v6, %v292_v2  ;;  %s941_s29 = scalar_lea.hbm %s995_s4, %s495_s12  ;;  %s945_s18 = scalar_lea.sflag [#allocation4], %s252_s1 }
  0x5a   : > { %s665_s8 = scalar_lea.vmem %s936_s11, 128  ;;  %p1019_p12 = scmp.ne.s32.totalorder %s1005_s26, 0 }
  0x5b   : > { %307 = vrot.lane.b32.xlu1 %v292_v2, %s760_s6  ;;  %303 = vrot.lane.b32.xlu0 %v290_v3, %s760_s6  ;;  %p666_p9 = scmp.ne.s32.totalorder %s936_s11, %s665_s8  ;;  %s762_s30 = smov [#allocation8]  }
  0x5c   : > { %s669_s23 = sshll.u32 %s762_s30, 4  ;;  %s670_s23 = int_to_ptr.vmem [resolvable:$false] %s669_s23 }
  0x5d   : > { %p667_p13 = pnand %p666_p9, %p1019_p12  ;;  %s671_s0 = scalar_lea.vmem %s670_s23, 256 }
  0x5e   : > { %p672_p2 = scmp.lt.s32.totalorder %s936_s11, %s670_s23  ;;  %p673_p6 = scmp.lt.s32.totalorder %s671_s0, %s665_s8 }
  0x5f   : > { %295 = vrot.lane.b32.xlu1 %v290_v3, %s761_s21  ;;  %293 = vrot.lane.b32.xlu0 %v289_v1, %s761_s21  ;;  %p668_p4 = pneg %p667_p13 }
  0x60   : > { %p674_p11 = por %p673_p6, %p672_p2 }
  0x62   : > { %p675_p1 = pnand %p674_p11, %p668_p4 }
  0x63   : > { %299 = vrot.lane.b32.xlu1 %v292_v2, %s761_s21  ;;  %297 = vrot.lane.b32.xlu0 %v291_v0, %s761_s21 }
  0xc9   : > { %v306_v4 = vpop.permute.xlu1 %305  ;;  %v302_v5 = vpop.permute.xlu0 %301 }
  0xca   : > { %v315_v9 = vmul.f32 %v314_v7, %v302_v5  ;;  %v317_v17 = vmul.f32 %v314_v7, %v306_v4 }
  0xcc   : > { %v319_v18 = vadd.f32 %v315_v9, %v310_v8  ;;  %v321_v29 = vadd.f32 %v317_v17, %v312_v15 }
  0xcd   : > { %v308_v10 = vpop.permute.xlu1 %307  ;;  %v304_v11 = vpop.permute.xlu0 %303 }
  0xce   : > { %v316_v13 = vmul.f32 %v314_v7, %v304_v11  ;;  %v318_v21 = vmul.f32 %v314_v7, %v308_v10 }
  0xd0   : > { %v320_v22 = vadd.f32 %v316_v13, %v311_v12  ;;  %v322_v30 = vadd.f32 %v318_v21, %v313_v16 }
  0xd1   : > { %v296_v19 = vpop.permute.xlu1 %295  ;;  %v294_v20 = vpop.permute.xlu0 %293 }
  0xd2   : > { %v325_v23 = vmul.f32 %v323_v14, %v296_v19  ;;  %v324_v24 = vmul.f32 %v323_v14, %v294_v20 }
  0xd4   : > { %v329_v25 = vadd.f32 %v325_v23, %v320_v22  ;;  %v328_v26 = vadd.f32 %v324_v24, %v319_v18 }
  0xd5   : > { %v300_v27 = vpop.permute.xlu1 %299  ;;  %v298_v28 = vpop.permute.xlu0 %297 }
  0xd6   : > { %333 = vst [vmem:[%s282_s10 + $0x2] sm:$0x3] %v329_v25  ;;  %332 = vst [vmem:[%s282_s10] sm:$0x3] %v328_v26  ;;  %v327_v31 = vmul.f32 %v323_v14, %v300_v27  ;;  %v326_v32 = vmul.f32 %v323_v14, %v298_v28 }
  0xd8   : > { %v331_v33 = vadd.f32 %v327_v31, %v322_v30  ;;  %v330_v34 = vadd.f32 %v326_v32, %v321_v29 }
  0xda   : > { %335 = vst [vmem:[%s282_s10 + $0x6] sm:$0x3] %v331_v33  ;;  %334 = vst [vmem:[%s282_s10 + $0x4] sm:$0x3] %v330_v34 }
  0xdb   : > { %678 = shalt.err (!%p675_p1)
}
  0xdc   : > { %s679_s1 = scalar_lea.hbm %s941_s29, 128  ;;  %s683_s24 = scalar_lea.hbm %s995_s4, 256 }
  0xdd   : > { %p680_p0 = scmp.ne.s32.totalorder %s941_s29, %s679_s1  ;;  %p684_p3 = scmp.lt.s32.totalorder %s941_s29, %s995_s4 }
  0xde   : > { %p685_p7 = scmp.lt.s32.totalorder %s683_s24, %s679_s1 }
  0xdf   : > { %p681_p10 = pnand %p680_p0, %p1019_p12 }
  0xe0   : > { %p686_p8 = por %p685_p7, %p684_p3 }
  0xe1   : > { %p682_p5 = pneg %p681_p10 }
  0xe3   : > { %p687_p9 = pnand %p686_p8, %p682_p5 }
  0xe5   : > { %690 = shalt.err (!%p687_p9)
}
  0xe6   : > { %s763_s9 = smov 32   ;;  %s764_s25 = smov 2  }
  0xe7   : > { %506 = dma.vmem_to_hbm [thread:$0]  (%p1019_p12), %s936_s11, 128, %s941_s29, %s945_s18, %s763_s9, %s763_s9, %s764_s25  }
  0xe8 PF: > { %s366_s10 = sand.u32 1, %s733_s15   ;;  %p1020_p13 = scmp.ne.s32.totalorder %s1006_s27, 0 }
  0xe9   : > { %p1021_p4 = scmp.ge.s32.totalorder %s753_s20, 2  ;;  %s367_s12 = scalar_lea.sflag [#allocation4], %s366_s10 }
  0xeb   : > { %p520_p2 = pnand %p1021_p4, %p1020_p13 }
  0xed   : > { %p521_p6 = pneg %p520_p2 }
  0xef   : > { %728 = dma.done.wait (%p521_p6), %s367_s12, 128  }
  0xf0   : > { %730 = vsyncadd (%p521_p6), %s367_s12, 4294967168  ;;  %s19_s20 = sadd.s32 1, %s753_s20   ;;  %s1022_s15 = smov %s737_s16 }
  0xf1   : > { %p16_p11 = scmp.ge.s32.totalorder %s19_s20, 4   ;;  %s1023_s16 = smov %s741_s17 }
  0xf2   : > { %s1024_s17 = smov %s904_s7  ;;  %s1025_s18 = smov %s749_s19 }
  0xf3   : > { %s1026_s19 = smov %s1028_s22  ;;  %18 = sbr.rel (!%p16_p11) target bundleno = 9 (0x9), region = 93 }
  0xf8   :  { %372 = vsyncpa [#allocation3], 1 }
  0xf9   :  { %374 = vsyncpa [#allocation3 + $0x1], 1 }
  0xfa   :  { %375 = vsyncpa [#allocation6], 1 }
  0xfb   :  { %376 = vsyncpa [#allocation4], 1 }
  0xfc   :  { %378 = vsyncpa [#allocation4 + $0x1], 1 }

</bundles_post_ra>
